<compile_context>
chip_gen: v5e
topology: v5e:2x2
jax: 0.10.0
libtpu: 0.0.40
codegen_flags: <defaults>
</compile_context>

<pallas_src>
import numpy as np
import jax
import jax.numpy as jnp
from jax import lax
from jax.experimental import pallas as pl
from jax.experimental.pallas import tpu as pltpu

MAX_LENGTH = 77          # BERTTokenizer(max_length=77)
CLS_ID, SEP_ID, PAD_ID = 101, 102, 0
SEQ_PAD = 128            # lane-aligned working width inside the kernel
TB_MAX = 1024            # max batch rows per grid step (multiple of 8; ~1.5 MiB/step)


def _pack_kernel(tokens_ref, lengths_ref, out_ref):
    tb, w = out_ref.shape                                     # (TB, SEQ_PAD)
    toks = tokens_ref[...]                                    # [TB, W] int32
    # output position i carries raw token i-1 -> lane roll by +1 (XLU slot, ~free
    # alongside the VPU selects below)
    shifted = pltpu.roll(toks, shift=1, axis=1)
    pos = lax.broadcasted_iota(jnp.int32, (tb, w), 1)         # [TB, W] position ids
    # truncation=True: at most max_length-2 content tokens (room for [CLS]/[SEP])
    content_len = jnp.minimum(lengths_ref[...], MAX_LENGTH - 2)   # [TB, 1], broadcasts
    out = jnp.where(pos == 0, CLS_ID,
          jnp.where(pos <= content_len, shifted,
          jnp.where(pos == content_len + 1, SEP_ID, PAD_ID)))
    out_ref[...] = out.astype(jnp.int32)                      # full 128-lane dense store


def bert_tokenizer_forward(raw_tokens, lengths, tb=None):
    """raw_tokens: int32 [B, W] synthetic wordpiece ids (W == SEQ_PAD is the fast,
    zero-copy path); lengths: int32 [B].  Returns int32 [B, MAX_LENGTH]."""
    B, raw_w = raw_tokens.shape

    if raw_w == SEQ_PAD:
        toks = raw_tokens.astype(jnp.int32)                   # pass-through, no host pad
    elif raw_w > SEQ_PAD:
        # only the first MAX_LENGTH-2 (=75) columns can ever be selected
        toks = raw_tokens[:, :SEQ_PAD].astype(jnp.int32)
    else:
        # TODO(synk): non-lane-aligned containers take one host pad; the demo / fast
        # path supplies SEQ_PAD-wide buffers directly so this never runs there.
        toks = jnp.pad(raw_tokens.astype(jnp.int32), ((0, 0), (0, SEQ_PAD - raw_w)))
    lens = lengths.reshape(B, 1).astype(jnp.int32)

    if tb is None:
        tb = B if B <= TB_MAX else TB_MAX                     # small B: single full block
    grid = (pl.cdiv(B, tb),)

    out = pl.pallas_call(
        _pack_kernel,
        out_shape=jax.ShapeDtypeStruct((B, SEQ_PAD), jnp.int32),
        grid=grid,
        in_specs=[
            pl.BlockSpec((tb, SEQ_PAD), lambda i: (i, 0)),
            pl.BlockSpec((tb, 1), lambda i: (i, 0)),          # aligned with batch grid
        ],
        out_specs=pl.BlockSpec((tb, SEQ_PAD), lambda i: (i, 0)),
        compiler_params=pltpu.CompilerParams(
            dimension_semantics=("parallel",)),               # megacore shard on v7x
    )(toks, lens)
    # kernel stores a lane-dense 128-wide block; the narrow view is sliced once here
    return out[:, :MAX_LENGTH]                                # [B, 77] int32


def _reference(raw_tokens, lengths):
    raw = np.asarray(raw_tokens)
    out = np.zeros((raw.shape[0], MAX_LENGTH), np.int32)
    for b in range(raw.shape[0]):
        L = min(int(lengths[b]), MAX_LENGTH - 2)
        out[b, 0] = CLS_ID
        out[b, 1:1 + L] = raw[b, :L]
        out[b, 1 + L] = SEP_ID
    return out


if __name__ == "__main__":
    key = jax.random.PRNGKey(0)
    k1, k2, k3, k4 = jax.random.split(key, 4)

    # TODO(synk): HuggingFace WordPiece string tokenization has no Pallas equivalent;
    # raw wordpiece ids / lengths are synthesized deterministically instead.
    # Case 1: tiny batch, SEQ_PAD-wide container (zero-copy fast path, single block).
    B = 2
    raw_tokens = jax.random.randint(k1, (B, SEQ_PAD), 1000, 30522, dtype=jnp.int32)
    lengths = jax.random.randint(k2, (B,), 5, 90, dtype=jnp.int32)

    tokens = bert_tokenizer_forward(raw_tokens, lengths)
    tokens = jax.block_until_ready(tokens)
    assert tokens.shape == (B, MAX_LENGTH) and tokens.dtype == jnp.int32
    np.testing.assert_array_equal(np.asarray(tokens), _reference(raw_tokens, lengths))

    # Case 2: slightly larger batch with an explicit multi-step batch grid (tb=8).
    B2 = 16
    raw_tokens2 = jax.random.randint(k3, (B2, SEQ_PAD), 1000, 30522, dtype=jnp.int32)
    lengths2 = jax.random.randint(k4, (B2,), 5, 120, dtype=jnp.int32)

    tokens2 = bert_tokenizer_forward(raw_tokens2, lengths2, tb=8)
    tokens2 = jax.block_until_ready(tokens2)
    assert tokens2.shape == (B2, MAX_LENGTH) and tokens2.dtype == jnp.int32
    np.testing.assert_array_equal(np.asarray(tokens2), _reference(raw_tokens2, lengths2))

    print("KERNEL_OK")
</pallas_src>

<mosaic_0001>
module attributes {stable_mosaic.version = 11 : i64} {
  func.func @_pack_kernel(%arg0: i32, %arg1: memref<2x128xi32, #tpu.memory_space<vmem>>, %arg2: memref<2x1xi32, #tpu.memory_space<vmem>>, %arg3: memref<2x128xi32, #tpu.memory_space<vmem>>) attributes {dimension_semantics = [#tpu.dimension_semantics<parallel>], iteration_bounds = array<i64: 1>, scalar_prefetch = 0 : i64, scratch_operands = 0 : i64, tpu.core_type = #tpu.core_type<tc>, window_params = [{transform_indices = @transform_0, window_bounds = array<i64: 2, 128>}, {transform_indices = @transform_1, window_bounds = array<i64: 2, 1>}, {transform_indices = @transform_2, window_bounds = array<i64: 2, 128>}]} {
    %c0 = arith.constant 0 : index
    %c0_0 = arith.constant 0 : index
    %0 = vector.load %arg1[%c0, %c0_0] : memref<2x128xi32, #tpu.memory_space<vmem>>, vector<2x128xi32>
    %c1_i32 = arith.constant 1 : i32
    %1 = tpu.dynamic_rotate %0 by %c1_i32 dim 1 : vector<2x128xi32>, i32 -> vector<2x128xi32>
    %2 = tpu.iota {dimensions = array<i32: 1>} : vector<2x128xi32>
    %c0_1 = arith.constant 0 : index
    %c0_2 = arith.constant 0 : index
    %3 = vector.load %arg2[%c0_1, %c0_2] : memref<2x1xi32, #tpu.memory_space<vmem>>, vector<2x1xi32>
    %c75_i32 = arith.constant 75 : i32
    %4 = vector.broadcast %c75_i32 : i32 to vector<2x1xi32>
    %5 = arith.minsi %3, %4 : vector<2x1xi32>
    %c0_i32 = arith.constant 0 : i32
    %6 = vector.broadcast %c0_i32 : i32 to vector<2x128xi32>
    %7 = arith.cmpi eq, %2, %6 : vector<2x128xi32>
    %8 = vector.broadcast %5 : vector<2x1xi32> to vector<2x128xi32>
    %9 = arith.cmpi sle, %2, %8 : vector<2x128xi32>
    %c1_i32_3 = arith.constant 1 : i32
    %10 = vector.broadcast %c1_i32_3 : i32 to vector<2x1xi32>
    %11 = arith.addi %5, %10 : vector<2x1xi32>
    %12 = vector.broadcast %11 : vector<2x1xi32> to vector<2x128xi32>
    %13 = arith.cmpi eq, %2, %12 : vector<2x128xi32>
    %c102_i32 = arith.constant 102 : i32
    %c0_i32_4 = arith.constant 0 : i32
    %14 = vector.broadcast %c102_i32 : i32 to vector<2x128xi32>
    %15 = vector.broadcast %c0_i32_4 : i32 to vector<2x128xi32>
    %16 = arith.select %13, %14, %15 : vector<2x128xi1>, vector<2x128xi32>
    %17 = arith.select %9, %1, %16 : vector<2x128xi1>, vector<2x128xi32>
    %c101_i32 = arith.constant 101 : i32
    %18 = vector.broadcast %c101_i32 : i32 to vector<2x128xi32>
    %19 = arith.select %7, %18, %17 : vector<2x128xi1>, vector<2x128xi32>
    %c0_5 = arith.constant 0 : index
    %c0_6 = arith.constant 0 : index
    %20 = vector.load %arg3[%c0_5, %c0_6] : memref<2x128xi32, #tpu.memory_space<vmem>>, vector<2x128xi32>
    tpu.vector_store %arg3[%c0_5, %c0_6], %19 {strides = array<i32>} : memref<2x128xi32, #tpu.memory_space<vmem>>, vector<2x128xi32>,
    return
  }
  func.func @transform_0(%arg0: i32) -> (i32, i32) {
    %c0_i32 = arith.constant 0 : i32
    %c0_i32_0 = arith.constant 0 : i32
    return %arg0, %c0_i32 : i32, i32
  }
  func.func @transform_1(%arg0: i32) -> (i32, i32) {
    %c0_i32 = arith.constant 0 : i32
    %c0_i32_0 = arith.constant 0 : i32
    return %arg0, %c0_i32 : i32, i32
  }
  func.func @transform_2(%arg0: i32) -> (i32, i32) {
    %c0_i32 = arith.constant 0 : i32
    %c0_i32_0 = arith.constant 0 : i32
    return %arg0, %c0_i32 : i32, i32
  }
}

</mosaic_0001>

<bundles_post_ra>
// kernel: tpu_custom_call.1
= control target key start
LH: loop header
LB: loop body
LE: loop exit
PB: predicated region body
PF: predicated region fallthrough
CT: control target
= control target key end

     0   :  { %v80_v2 = vmov 0   ;;  %s81_s13 = smov 1   ;;  %s107_s0 = inlined_call_operand.vmem [shape: s32[2,128], index: 0, kind: input, shape index: {}]   ;;  %s108_s1 = inlined_call_operand.vmem [shape: s32[2,1], index: 1, kind: input, shape index: {}]   ;;  %s109_s2 = inlined_call_operand.hbm [shape: s32[2,128], index: 2, kind: output, shape index: {}]  }
   0x1   :  { %v17_v0 = vld [vmem:[%s108_s1] sm:$0x3]  ;;  %53 = vset.pattern.permute.xlu0 %v80_v2 }
   0x2   :  { %v12_v1 = vld [vmem:[%s107_s0] sm:$0x3]  ;;  %vm18_vm0 = vcmp.lt.s32.totalorder %v17_v0, 75 }
   0x3   :  { %13 = vrot.lane.b32.xlu1 %v12_v1, %s81_s13 }
   0x4   :  { %7 = vsyncpa [#allocation3], 0  ;;  %v19_v3 = vsel %vm18_vm0, %v17_v0, 75  ;;  %v15_v5 = vlaneseq  ;;  %s82_s1 = smov [#allocation2]   ;;  %s41_s0 = sshll.u32 %s109_s2, 4  ;;  %s42_s0 = int_to_ptr.hbm [resolvable:$true] %s41_s0 }
   0x5   :  { %v25_v4 = vadd.s32 1, %v19_v3  ;;  %s39_s14 = sshll.u32 %s82_s1, 4  ;;  %s40_s14 = int_to_ptr.vmem [resolvable:$true] %s39_s14 }
   0x6   :  { %v16_v7 = vand.u32 127, %v15_v5 }
   0x7   :  { %27 = vperm.xlu0 %53, %v25_v4  }
   0x8   :  { %vm20_vm2 = vcmp.eq.s32.totalorder %v16_v7, 0 }
   0xf   :  { %22 = vperm.xlu0 %53, %v19_v3  }
  0x75   :  { %v14_v8 = vpop.permute.xlu1 %13 }
  0x79   :  { %v28_v6 = vpop.permute.xlu0 %27 }
  0x7a   :  { %vm29_vm1 = vcmp.eq.s32.totalorder %v16_v7, %v28_v6 }
  0x7b   :  { %v30_v10 = vsel %vm29_vm1, 102, %v80_v2 }
  0x81   :  { %v23_v9 = vpop.permute.xlu0 %22 }
  0x82   :  { %vm24_vm3 = vcmp.le.s32.totalorder %v16_v7, %v23_v9 }
  0x83   :  { %v31_v11 = vsel %vm24_vm3, %v14_v8, %v30_v10 }
  0x84   :  { %v32_v12 = vsel %vm20_vm2, 101, %v31_v11 }
  0x85   :  { %33 = vst [vmem:[#allocation2] sm:$0x3] %v32_v12 }
  0x86   :  { %44 = dma.vmem_to_hbm [thread:$0]  %s40_s14, 32, %s42_s0, [#allocation3]  }
  0x87   :  { %78 = dma.done.wait [#allocation3], 32  }
  0x88   :  { %79 = vsyncadd [#allocation3], 4294967264 }
  0x89   :  { %49 = vsyncpa [#allocation3], 1 }

</bundles_post_ra>
